<compile_context>
chip_gen: v7x
topology: tpu7x:2x2x1
jax: 0.10.0
libtpu: 0.0.40
codegen_flags: <defaults>
</compile_context>

<pallas_src>
import jax
import jax.numpy as jnp
from jax.experimental import pallas as pl
from jax.experimental.pallas import tpu as pltpu


def _round_up(x, m):
    return (x + m - 1) // m * m


def matrix_model_kernel(t_ref, ab_ref, o_ref):
    # t_ref:  (TN, 1)  batch of t values on the sublane axis
    # ab_ref: (2, M)   row 0 = A @ theta, row 1 = B @ theta (grid-invariant)
    # o_ref:  (TN, M)  output tile already in the module's (N, M) orientation
    #
    # Single fused broadcast multiply-add on the VPU; no MXU, no in-kernel
    # transposes, no per-step recompute.
    a_th = ab_ref[0:1, :]            # (1, M)
    b_th = ab_ref[1:2, :]            # (1, M)
    o_ref[...] = a_th + t_ref[...] * b_th


def matrix_model_forward(t, A, B, theta, *, block_rows=None, use_pallas=None):
    """model(t) = (A + t B) @ theta.  t: (N,), A/B: (M, K), theta: (K, 1).

    Returns (N, M) float32, matching the torch einsum exactly (up to f32
    rounding from distributing theta over the sum).
    """
    t = t.astype(jnp.float32).reshape(-1)
    N = t.shape[0]
    M, K = A.shape
    assert theta.shape == (K, 1), (
        "MatrixModel fixes theta to shape (K, 1); got %s" % (theta.shape,))

    # Hoisted, grid-invariant prologue:
    #   (A + t B) @ theta == A@theta + t * (B@theta).
    a_th = jnp.matmul(A.astype(jnp.float32), theta.astype(jnp.float32)).reshape(1, M)
    b_th = jnp.matmul(B.astype(jnp.float32), theta.astype(jnp.float32)).reshape(1, M)

    # Small-problem fallback: for tiny N*M the kernel launch + padding overhead
    # is a guaranteed regression; plain jnp is exact and fast there.
    if use_pallas is None:
        use_pallas = N * M >= (1 << 17)
    if not use_pallas:
        return a_th + t[:, None] * b_th

    # --- Tile sizing ------------------------------------------------------
    # Target ~2 MiB per output block so the DMA (~1-2 us/step) dominates the
    # ~0.35 us fixed per-step overhead, while the double-buffered footprint
    # (~4.5 MiB) stays under every generation's default scoped-VMEM limit
    # (v5e 16 MiB, v6e/v7x 32 MiB).
    n_pad8 = _round_up(N, 8)
    target_bytes = 2 * 1024 * 1024
    if block_rows is None:
        target_rows = max(8, (target_bytes // (M * 4)) // 8 * 8)
    else:
        target_rows = max(8, _round_up(block_rows, 8))
    steps = max(1, pl.cdiv(n_pad8, target_rows))
    # v7x has 2 TensorCores: if everything fits in one step but the problem is
    # big enough, split the parallel axis so both cores get work.
    if block_rows is None and steps == 1 and n_pad8 >= 2 * 4096:
        steps = 2
    tn = _round_up(pl.cdiv(n_pad8, steps), 8)
    n_pad = steps * tn                      # padding < one tile, sliced off below

    t_col = jnp.pad(t, (0, n_pad - N)).reshape(n_pad, 1)
    ab = jnp.concatenate([a_th, b_th], axis=0)      # (2, M) packed constants

    # Explicit scoped-VMEM budget (matters on v5e when tiles are grown);
    # clipped to 32 MiB which is safe on v5e/v6e/v7x.
    block_vmem = 4 * (tn * M + tn + 2 * M)          # one buffer set
    vmem_limit = int(min(max(4 * block_vmem, 4 << 20), 32 << 20))

    cost = pl.CostEstimate(
        flops=2 * M * n_pad,
        transcendentals=0,
        bytes_accessed=4 * (M * n_pad + n_pad + 2 * M),
    )

    out = pl.pallas_call(
        matrix_model_kernel,
        out_shape=jax.ShapeDtypeStruct((n_pad, M), jnp.float32),
        grid_spec=pltpu.PrefetchScalarGridSpec(
            num_scalar_prefetch=0,
            grid=(steps,),
            in_specs=[
                pl.BlockSpec((tn, 1), lambda i: (i, 0)),   # t tile (sublanes)
                pl.BlockSpec((2, M), lambda i: (0, 0)),    # packed A@theta/B@theta
            ],
            out_specs=pl.BlockSpec((tn, M), lambda i: (i, 0)),
        ),
        compiler_params=pltpu.CompilerParams(
            dimension_semantics=("parallel",),
            vmem_limit_bytes=vmem_limit,
        ),
        cost_estimate=cost,
    )(t_col, ab)

    # Padded rows hold a_th values (not zeros); slice them off.  No transpose:
    # the kernel already produced the module's (N, M) layout.
    return out[:N]


if __name__ == "__main__":
    key = jax.random.PRNGKey(0)
    k_a, k_b, k_t1, k_t2 = jax.random.split(key, 4)

    M = 16        # rows of A / B
    K = 10        # columns of A / B (fixed by theta = ones(10, 1) in the module)

    A = jax.random.normal(k_a, (M, K), dtype=jnp.float32)
    B = jax.random.normal(k_b, (M, K), dtype=jnp.float32)
    theta = jnp.ones((K, 1), dtype=jnp.float32)   # nn.Parameter(torch.ones(10, 1))

    def reference(t):
        return jnp.einsum("ijk,kt->ij",
                          A[None, :, :] + t.reshape(-1, 1, 1) * B[None, :, :],
                          theta)

    # Case 1: tiny batch (module-demo size), kernel path forced so the Pallas
    # kernel itself is exercised and verified.
    t_small = jax.random.normal(k_t1, (16,), dtype=jnp.float32)
    out_small = jax.block_until_ready(
        matrix_model_forward(t_small, A, B, theta, use_pallas=True))
    assert out_small.shape == (16, M)
    assert jnp.allclose(out_small, reference(t_small), atol=1e-5, rtol=1e-5)

    # Case 2: non-multiple-of-8 batch with a forced multi-step grid, exercising
    # padding + the "parallel" batch axis pipeline.
    t_odd = jax.random.normal(k_t2, (300,), dtype=jnp.float32)
    out_odd = jax.block_until_ready(
        matrix_model_forward(t_odd, A, B, theta, use_pallas=True, block_rows=64))
    assert out_odd.shape == (300, M)
    assert jnp.allclose(out_odd, reference(t_odd), atol=1e-5, rtol=1e-5)

    # Case 3: small-problem jnp fallback agrees with the kernel / reference.
    out_fb = jax.block_until_ready(matrix_model_forward(t_small, A, B, theta))
    assert jnp.allclose(out_fb, reference(t_small), atol=1e-5, rtol=1e-5)

    print("KERNEL_OK")
</pallas_src>

<mosaic_0001>
module attributes {stable_mosaic.version = 11 : i64} {
  func.func @matrix_model_kernel(%arg0: i32, %arg1: memref<16x1xf32, #tpu.memory_space<vmem>>, %arg2: memref<2x16xf32, #tpu.memory_space<vmem>>, %arg3: memref<16x16xf32, #tpu.memory_space<vmem>>) attributes {dimension_semantics = [#tpu.dimension_semantics<parallel>], iteration_bounds = array<i64: 1>, scalar_prefetch = 0 : i64, scratch_operands = 0 : i64, tpu.core_type = #tpu.core_type<tc>, window_params = [{transform_indices = @transform_0, window_bounds = array<i64: 16, 1>}, {pipeline_mode = #tpu.pipeline_mode<synchronous>, transform_indices = @transform_1, window_bounds = array<i64: 2, 16>}, {transform_indices = @transform_2, window_bounds = array<i64: 16, 16>}]} {
    %c0 = arith.constant 0 : index
    %c0_0 = arith.constant 0 : index
    %0 = vector.load %arg2[%c0, %c0_0] : memref<2x16xf32, #tpu.memory_space<vmem>>, vector<1x16xf32>
    %c1 = arith.constant 1 : index
    %c0_1 = arith.constant 0 : index
    %1 = vector.load %arg2[%c1, %c0_1] : memref<2x16xf32, #tpu.memory_space<vmem>>, vector<1x16xf32>
    %c0_2 = arith.constant 0 : index
    %c0_3 = arith.constant 0 : index
    %2 = vector.load %arg1[%c0_2, %c0_3] : memref<16x1xf32, #tpu.memory_space<vmem>>, vector<16x1xf32>
    %3 = vector.broadcast %2 : vector<16x1xf32> to vector<16x16xf32>
    %4 = vector.broadcast %1 : vector<1x16xf32> to vector<16x16xf32>
    %5 = arith.mulf %3, %4 : vector<16x16xf32>
    %6 = vector.broadcast %0 : vector<1x16xf32> to vector<16x16xf32>
    %7 = arith.addf %6, %5 : vector<16x16xf32>
    %c0_4 = arith.constant 0 : index
    %c0_5 = arith.constant 0 : index
    %8 = vector.load %arg3[%c0_4, %c0_5] : memref<16x16xf32, #tpu.memory_space<vmem>>, vector<16x16xf32>
    tpu.vector_store %arg3[%c0_4, %c0_5], %7 {strides = array<i32>} : memref<16x16xf32, #tpu.memory_space<vmem>>, vector<16x16xf32>,
    return
  }
  func.func @transform_0(%arg0: i32) -> (i32, i32) {
    %c0_i32 = arith.constant 0 : i32
    %c0_i32_0 = arith.constant 0 : i32
    return %arg0, %c0_i32 : i32, i32
  }
  func.func @transform_1(%arg0: i32) -> (i32, i32) {
    %c0_i32 = arith.constant 0 : i32
    %c0_i32_0 = arith.constant 0 : i32
    %c0_i32_1 = arith.constant 0 : i32
    return %c0_i32, %c0_i32_0 : i32, i32
  }
  func.func @transform_2(%arg0: i32) -> (i32, i32) {
    %c0_i32 = arith.constant 0 : i32
    %c0_i32_0 = arith.constant 0 : i32
    return %arg0, %c0_i32 : i32, i32
  }
}

</mosaic_0001>

<bundles_post_ra>
// kernel: tpu_custom_call.1
= control target key start
LH: loop header
LB: loop body
LE: loop exit
PB: predicated region body
PF: predicated region fallthrough
CT: control target
= control target key end

     0   :  { %s131_s0 = inlined_call_operand.vmem [shape: f32[16,1], index: 0, kind: input, shape index: {}]   ;;  %s132_s1 = inlined_call_operand.vmem [shape: f32[2,16], index: 1, kind: input, shape index: {}]   ;;  %s133_s2 = inlined_call_operand.hbm [shape: f32[16,16], index: 2, kind: output, shape index: {}]  }
   0x1   :  { %v14_v0 = vld [vmem:[%s131_s0] sm:$0xff] }
   0x2   :  { %7 = vsyncpa [#allocation3], 0  ;;  %v88_v1 = vmov 0   ;;  %v15_v2 = vld [vmem:[%s131_s0 + $0x8] sm:$0xff]  ;;  %v57_v3 = vld [vmem:[%s132_s1 + $0x1] ss:$0 sm:$0xff] }
   0x3   :  { %63 = vset.pattern.permute.xlu0 %v88_v1  ;;  %v58_v5 = vld [vmem:[%s132_s1] ss:$0 sm:$0xff]  ;;  %vm38_vm0 = vcmask 130048   ;;  %s89_s17 = smov [#allocation2]  }
   0x4   :  { %18 = vperm.xlu0 %63, %v14_v0   ;;  %s46_s18 = sshll.u32 %s89_s17, 4  ;;  %s47_s18 = int_to_ptr.vmem [resolvable:$true] %s46_s18 }
   0x5   :  { %s64_s0 = scalar_lea.vmem %s47_s18, 256  ;;  %p69_p1 = scmp.lt.s32.totalorder %s47_s18, %s47_s18 }
   0x6   :  { %p65_p0 = scmp.ne.s32.totalorder %s47_s18, %s64_s0  ;;  %p70_p2 = scmp.lt.s32.totalorder %s64_s0, %s64_s0 }
   0x8   :  { %23 = vperm.xlu0 %63, %v15_v2   ;;  %p71_p3 = por %p70_p2, %p69_p1 }
   0xa   :  { %p72_p4 = pnand %p71_p3, %p65_p0 }
  0x83   :  { %v19_v4 = vpop.permute.xlu0 %18 }
  0x84   :  { %v30_v6 = vmul.f32 %v57_v3, %v19_v4 }
  0x86   :  { %v36_v7 = vadd.f32 %v58_v5, %v30_v6 }
  0x87   :  { %v24_v8 = vpop.permute.xlu0 %23 }
  0x88   :  { %39 = vst.msk [vmem:[#allocation2] sm:$0xff] %vm38_vm0, %v36_v7  ;;  %v31_v9 = vmul.f32 %v57_v3, %v24_v8 }
  0x8a   :  { %v37_v10 = vadd.f32 %v58_v5, %v31_v9 }
  0x8c   :  { %40 = vst.msk [vmem:[#allocation2 + $0x8] sm:$0xff] %vm38_vm0, %v37_v10 }
  0x8d   :  { %75 = shalt.err (!%p72_p4)
}
  0x8e   :  { %s76_s20 = scalar_lea.hbm %s133_s2, 256 }
  0x8f   :  { %p77_p5 = scmp.ne.s32.totalorder %s133_s2, %s76_s20  ;;  %p80_p6 = scmp.lt.u32.totalorder %s76_s20, %s133_s2 }
  0x91   :  { %p82_p7 = pnand %p80_p6, %p77_p5 }
  0x93   :  { %85 = shalt.err (!%p82_p7)
}
  0x94   :  { %s90_s25 = smov 128   ;;  %s91_s26 = smov 8  }
  0x95   :  { %52 = dma.vmem_to_hbm [thread:$0]  %s47_s18, 256, %s133_s2, [#allocation3], %s90_s25, %s90_s25, %s91_s26  }
  0x96   :  { %86 = dma.done.wait [#allocation3], 256  }
  0x97   :  { %87 = vsyncadd [#allocation3], 4294967040 }
  0x98   :  { %56 = vsyncpa [#allocation3], 1 }

</bundles_post_ra>
